<compile_context>
chip_gen: v6e
topology: v6e:2x2x1
jax: 0.10.0
libtpu: 0.0.40
codegen_flags: <defaults>
</compile_context>

<pallas_src>
import functools

import jax
import jax.numpy as jnp
from jax.experimental import pallas as pl
from jax.experimental.pallas import tpu as pltpu


def _round_up(x: int, m: int) -> int:
    return ((x + m - 1) // m) * m


def _pick_ff_tile(d_ff: int, block_ff: int) -> int:
    """Largest multiple of 128 that divides d_ff and is <= block_ff, else d_ff."""
    if d_ff % 128 != 0:
        return d_ff
    best = d_ff
    t = 128
    while t <= min(block_ff, d_ff):
        if d_ff % t == 0:
            best = t
        t += 128
    return best if best <= block_ff else d_ff


# ----------------------------------------------------------------------------
# Kernels
# ----------------------------------------------------------------------------

def _ffn_kernel(x_ref, w1_ref, b1_ref, w2_ref, b2_ref, o_ref, acc_ref, *,
                activation):
    """Non-gated FFN: acc += act(x @ W1_tile + b1_tile) @ W2_tile."""
    f = pl.program_id(1)

    @pl.when(f == 0)
    def _():
        acc_ref[...] = jnp.zeros_like(acc_ref)

    h = jnp.dot(x_ref[...], w1_ref[...],
                preferred_element_type=jnp.float32) + b1_ref[...]
    h = activation(h)
    # TODO(synk): nn.Dropout is identity in eval mode; train-time dropout would
    # use pltpu.prng_seed / pltpu.stateful_bernoulli here.
    acc_ref[...] += jnp.dot(h.astype(w2_ref.dtype), w2_ref[...],
                            preferred_element_type=jnp.float32)

    @pl.when(f == pl.num_programs(1) - 1)
    def _():
        o_ref[...] = (acc_ref[...] + b2_ref[...]).astype(o_ref.dtype)


def _ffn_gated_kernel(x_ref, w1_ref, b1_ref, wv_ref, bv_ref, w2_ref, b2_ref,
                      o_ref, acc_ref, *, activation):
    """Gated (GLU-style) FFN: acc += (act(xW1+b1) * (xWv+bv)) @ W2_tile."""
    f = pl.program_id(1)

    @pl.when(f == 0)
    def _():
        acc_ref[...] = jnp.zeros_like(acc_ref)

    x = x_ref[...]
    g = activation(jnp.dot(x, w1_ref[...],
                           preferred_element_type=jnp.float32) + b1_ref[...])
    v = jnp.dot(x, wv_ref[...],
                preferred_element_type=jnp.float32) + bv_ref[...]
    h = g * v
    acc_ref[...] += jnp.dot(h.astype(w2_ref.dtype), w2_ref[...],
                            preferred_element_type=jnp.float32)

    @pl.when(f == pl.num_programs(1) - 1)
    def _():
        o_ref[...] = (acc_ref[...] + b2_ref[...]).astype(o_ref.dtype)


# ----------------------------------------------------------------------------
# Wrapper
# ----------------------------------------------------------------------------

def position_wise_ffn(x, params, *, activation=jax.nn.relu, is_gated=False,
                      block_rows=256, block_ff=512):
    """Pallas forward matching PositionWiseFeedForward.forward (eval mode).

    x      : (..., d_model)
    params : dict with w1 (d_model,d_ff), w2 (d_ff,d_model) and optional
             b1 (d_ff,), b2 (d_model,), wv (d_model,d_ff), bv (d_ff,).
    """
    w1, w2 = params["w1"], params["w2"]
    d_model, d_ff = w1.shape
    orig_shape = x.shape
    assert orig_shape[-1] == d_model

    xf = x.reshape(-1, d_model)
    B = xf.shape[0]

    dtype = x.dtype
    b1 = params.get("b1")
    b2 = params.get("b2")
    b1 = (jnp.zeros((1, d_ff), dtype) if b1 is None else b1.reshape(1, d_ff))
    b2 = (jnp.zeros((1, d_model), dtype) if b2 is None else b2.reshape(1, d_model))

    # Token-tile size: large (well-pipelined) but a multiple of 8 sublanes.
    tb = min(block_rows, _round_up(B, 8))
    Bp = _round_up(B, tb)
    if Bp != B:
        xf = jnp.pad(xf, ((0, Bp - B), (0, 0)))

    # d_ff tile: multiple of 128 that divides d_ff, else take d_ff whole.
    tf = _pick_ff_tile(d_ff, block_ff)

    grid = (Bp // tb, d_ff // tf)

    x_spec = pl.BlockSpec((tb, d_model), lambda i, f: (i, 0))
    w1_spec = pl.BlockSpec((d_model, tf), lambda i, f: (0, f))
    b1_spec = pl.BlockSpec((1, tf), lambda i, f: (0, f))
    w2_spec = pl.BlockSpec((tf, d_model), lambda i, f: (f, 0))
    b2_spec = pl.BlockSpec((1, d_model), lambda i, f: (0, 0))
    out_spec = pl.BlockSpec((tb, d_model), lambda i, f: (i, 0))

    if is_gated:
        wv = params["wv"]
        bv = params.get("bv")
        bv = (jnp.zeros((1, d_ff), dtype) if bv is None else bv.reshape(1, d_ff))
        kernel = functools.partial(_ffn_gated_kernel, activation=activation)
        in_specs = [x_spec, w1_spec, b1_spec, w1_spec, b1_spec, w2_spec, b2_spec]
        operands = (xf, w1, b1, wv, bv, w2, b2)
    else:
        kernel = functools.partial(_ffn_kernel, activation=activation)
        in_specs = [x_spec, w1_spec, b1_spec, w2_spec, b2_spec]
        operands = (xf, w1, b1, w2, b2)

    out = pl.pallas_call(
        kernel,
        out_shape=jax.ShapeDtypeStruct((Bp, d_model), dtype),
        grid_spec=pltpu.PrefetchScalarGridSpec(
            num_scalar_prefetch=0,
            grid=grid,
            in_specs=in_specs,
            out_specs=out_spec,
            scratch_shapes=[pltpu.VMEM((tb, d_model), jnp.float32)],
        ),
        compiler_params=pltpu.CompilerParams(
            dimension_semantics=("parallel", "arbitrary"),
        ),
    )(*operands)

    return out[:B].reshape(orig_shape)


# ----------------------------------------------------------------------------
# Pure-JAX reference + init
# ----------------------------------------------------------------------------

def ffn_reference(x, params, *, activation=jax.nn.relu, is_gated=False):
    g = x @ params["w1"]
    if params.get("b1") is not None:
        g = g + params["b1"]
    g = activation(g)
    if is_gated:
        v = x @ params["wv"]
        if params.get("bv") is not None:
            v = v + params["bv"]
        h = g * v
    else:
        h = g
    y = h @ params["w2"]
    if params.get("b2") is not None:
        y = y + params["b2"]
    return y


def init_params(key, d_model, d_ff, *, is_gated, bias1=True, bias2=True,
                bias_gate=True):
    """Mirror nn.Linear default init (uniform(-1/sqrt(fan_in), 1/sqrt(fan_in)))."""
    ks = jax.random.split(key, 6)

    def linear(kw, kb, fan_in, fan_out, bias):
        bound = 1.0 / (fan_in ** 0.5)
        w = jax.random.uniform(kw, (fan_in, fan_out), jnp.float32, -bound, bound)
        b = (jax.random.uniform(kb, (fan_out,), jnp.float32, -bound, bound)
             if bias else None)
        return w, b

    params = {}
    params["w1"], params["b1"] = linear(ks[0], ks[1], d_model, d_ff, bias1)
    params["w2"], params["b2"] = linear(ks[2], ks[3], d_ff, d_model, bias2)
    if is_gated:
        params["wv"], params["bv"] = linear(ks[4], ks[5], d_model, d_ff, bias_gate)
    return params


# ----------------------------------------------------------------------------
# Test
# ----------------------------------------------------------------------------

if __name__ == "__main__":
    key = jax.random.PRNGKey(0)
    batch, seq, d_model, d_ff = 2, 8, 128, 512   # lane-dense d_model, d_ff = 4*d_model

    k_x, k_p1, k_p2, k_x2 = jax.random.split(key, 4)
    x = jax.random.normal(k_x, (batch, seq, d_model), jnp.float32)

    ok = True

    # Plain FFN with ReLU (module defaults).
    params = init_params(k_p1, d_model, d_ff, is_gated=False)
    out = position_wise_ffn(x, params, activation=jax.nn.relu, is_gated=False,
                            block_rows=256, block_ff=256)
    out = jax.block_until_ready(out)
    ref = ffn_reference(x, params, activation=jax.nn.relu, is_gated=False)
    ok &= bool(jnp.allclose(out, ref, atol=2e-5, rtol=2e-5))

    # Gated variant (GLU-style), exercising the linear_v branch.
    params_g = init_params(k_p2, d_model, d_ff, is_gated=True)
    out_g = position_wise_ffn(x, params_g, activation=jax.nn.relu, is_gated=True,
                              block_rows=256, block_ff=256)
    out_g = jax.block_until_ready(out_g)
    ref_g = ffn_reference(x, params_g, activation=jax.nn.relu, is_gated=True)
    ok &= bool(jnp.allclose(out_g, ref_g, atol=2e-5, rtol=2e-5))

    # Ragged token count (exercises the pad / un-pad path) + GELU activation.
    x_r = jax.random.normal(k_x2, (3, 7, d_model), jnp.float32)
    out_r = position_wise_ffn(x_r, params, activation=jax.nn.gelu, is_gated=False,
                              block_rows=256, block_ff=256)
    out_r = jax.block_until_ready(out_r)
    ref_r = ffn_reference(x_r, params, activation=jax.nn.gelu, is_gated=False)
    ok &= bool(jnp.allclose(out_r, ref_r, atol=1e-4, rtol=1e-4))

    if ok:
        print("KERNEL_OK")
    else:
        print("KERNEL_MISMATCH")
</pallas_src>

<mosaic_0001>
module attributes {stable_mosaic.version = 11 : i64} {
  func.func @_ffn_kernel(%arg0: i32, %arg1: i32, %arg2: memref<16x128xf32, #tpu.memory_space<vmem>>, %arg3: memref<128x256xf32, #tpu.memory_space<vmem>>, %arg4: memref<1x256xf32, #tpu.memory_space<vmem>>, %arg5: memref<256x128xf32, #tpu.memory_space<vmem>>, %arg6: memref<1x128xf32, #tpu.memory_space<vmem>>, %arg7: memref<16x128xf32, #tpu.memory_space<vmem>>, %arg8: memref<16x128xf32, #tpu.memory_space<vmem>>) attributes {dimension_semantics = [#tpu.dimension_semantics<parallel>, #tpu.dimension_semantics<arbitrary>], iteration_bounds = array<i64: 1, 2>, scalar_prefetch = 0 : i64, scratch_operands = 1 : i64, tpu.core_type = #tpu.core_type<tc>, window_params = [{transform_indices = @transform_0, window_bounds = array<i64: 16, 128>}, {transform_indices = @transform_1, window_bounds = array<i64: 128, 256>}, {transform_indices = @transform_2, window_bounds = array<i64: 1, 256>}, {transform_indices = @transform_3, window_bounds = array<i64: 256, 128>}, {pipeline_mode = #tpu.pipeline_mode<synchronous>, transform_indices = @transform_4, window_bounds = array<i64: 1, 128>}, {transform_indices = @transform_5, window_bounds = array<i64: 16, 128>}]} {
    %c0_i32 = arith.constant 0 : i32
    %0 = arith.cmpi eq, %arg1, %c0_i32 : i32
    %1 = arith.extui %0 : i1 to i32
    %c0_i32_0 = arith.constant 0 : i32
    %2 = arith.cmpi ne, %1, %c0_i32_0 : i32
    scf.if %2 {
      %cst_15 = arith.constant 0.000000e+00 : f32
      %19 = vector.broadcast %cst_15 : f32 to vector<16x128xf32>
      %c0_16 = arith.constant 0 : index
      %c0_17 = arith.constant 0 : index
      %20 = vector.load %arg8[%c0_16, %c0_17] : memref<16x128xf32, #tpu.memory_space<vmem>>, vector<16x128xf32>
      tpu.vector_store %arg8[%c0_16, %c0_17], %19 {strides = array<i32>} : memref<16x128xf32, #tpu.memory_space<vmem>>, vector<16x128xf32>,
    } else {
    }
    %c0 = arith.constant 0 : index
    %c0_1 = arith.constant 0 : index
    %3 = vector.load %arg2[%c0, %c0_1] : memref<16x128xf32, #tpu.memory_space<vmem>>, vector<16x128xf32>
    %c0_2 = arith.constant 0 : index
    %c0_3 = arith.constant 0 : index
    %4 = vector.load %arg3[%c0_2, %c0_3] : memref<128x256xf32, #tpu.memory_space<vmem>>, vector<128x256xf32>
    %cst = arith.constant dense<0.000000e+00> : vector<16x256xf32>
    %5 = tpu.matmul %3, %4, %cst {dimension_numbers = #tpu.dot_dimension_numbers<[1], [0], [0], [1], [0, 0, 1, 1], [], []>} : vector<16x128xf32>, vector<128x256xf32>, vector<16x256xf32> -> vector<16x256xf32>
    %c0_4 = arith.constant 0 : index
    %c0_5 = arith.constant 0 : index
    %6 = vector.load %arg4[%c0_4, %c0_5] : memref<1x256xf32, #tpu.memory_space<vmem>>, vector<1x256xf32>
    %7 = vector.broadcast %6 : vector<1x256xf32> to vector<16x256xf32>
    %8 = arith.addf %5, %7 : vector<16x256xf32>
    %cst_6 = arith.constant 0.000000e+00 : f32
    %9 = vector.broadcast %cst_6 : f32 to vector<16x256xf32>
    %10 = arith.maximumf %8, %9 : vector<16x256xf32>
    %c0_7 = arith.constant 0 : index
    %c0_8 = arith.constant 0 : index
    %11 = vector.load %arg8[%c0_7, %c0_8] : memref<16x128xf32, #tpu.memory_space<vmem>>, vector<16x128xf32>
    %c0_9 = arith.constant 0 : index
    %c0_10 = arith.constant 0 : index
    %12 = vector.load %arg5[%c0_9, %c0_10] : memref<256x128xf32, #tpu.memory_space<vmem>>, vector<256x128xf32>
    %cst_11 = arith.constant dense<0.000000e+00> : vector<16x128xf32>
    %13 = tpu.matmul %10, %12, %cst_11 {dimension_numbers = #tpu.dot_dimension_numbers<[1], [0], [0], [1], [0, 0, 1, 1], [], []>} : vector<16x256xf32>, vector<256x128xf32>, vector<16x128xf32> -> vector<16x128xf32>
    %14 = arith.addf %11, %13 : vector<16x128xf32>
    %c0_12 = arith.constant 0 : index
    %c0_13 = arith.constant 0 : index
    %15 = vector.load %arg8[%c0_12, %c0_13] : memref<16x128xf32, #tpu.memory_space<vmem>>, vector<16x128xf32>
    tpu.vector_store %arg8[%c0_12, %c0_13], %14 {strides = array<i32>} : memref<16x128xf32, #tpu.memory_space<vmem>>, vector<16x128xf32>,
    %c1_i32 = arith.constant 1 : i32
    %16 = arith.cmpi eq, %arg1, %c1_i32 : i32
    %17 = arith.extui %16 : i1 to i32
    %c0_i32_14 = arith.constant 0 : i32
    %18 = arith.cmpi ne, %17, %c0_i32_14 : i32
    scf.if %18 {
      %c0_15 = arith.constant 0 : index
      %c0_16 = arith.constant 0 : index
      %19 = vector.load %arg8[%c0_15, %c0_16] : memref<16x128xf32, #tpu.memory_space<vmem>>, vector<16x128xf32>
      %c0_17 = arith.constant 0 : index
      %c0_18 = arith.constant 0 : index
      %20 = vector.load %arg6[%c0_17, %c0_18] : memref<1x128xf32, #tpu.memory_space<vmem>>, vector<1x128xf32>
      %21 = vector.broadcast %20 : vector<1x128xf32> to vector<16x128xf32>
      %22 = arith.addf %19, %21 : vector<16x128xf32>
      %c0_19 = arith.constant 0 : index
      %c0_20 = arith.constant 0 : index
      %23 = vector.load %arg7[%c0_19, %c0_20] : memref<16x128xf32, #tpu.memory_space<vmem>>, vector<16x128xf32>
      tpu.vector_store %arg7[%c0_19, %c0_20], %22 {strides = array<i32>} : memref<16x128xf32, #tpu.memory_space<vmem>>, vector<16x128xf32>,
    } else {
    }
    return
  }
  func.func @transform_0(%arg0: i32, %arg1: i32) -> (i32, i32) {
    %c0_i32 = arith.constant 0 : i32
    %c0_i32_0 = arith.constant 0 : i32
    return %arg0, %c0_i32 : i32, i32
  }
  func.func @transform_1(%arg0: i32, %arg1: i32) -> (i32, i32) {
    %c0_i32 = arith.constant 0 : i32
    %c0_i32_0 = arith.constant 0 : i32
    return %c0_i32, %arg1 : i32, i32
  }
  func.func @transform_2(%arg0: i32, %arg1: i32) -> (i32, i32) {
    %c0_i32 = arith.constant 0 : i32
    %c0_i32_0 = arith.constant 0 : i32
    return %c0_i32, %arg1 : i32, i32
  }
  func.func @transform_3(%arg0: i32, %arg1: i32) -> (i32, i32) {
    %c0_i32 = arith.constant 0 : i32
    %c0_i32_0 = arith.constant 0 : i32
    return %arg1, %c0_i32 : i32, i32
  }
  func.func @transform_4(%arg0: i32, %arg1: i32) -> (i32, i32) {
    %c0_i32 = arith.constant 0 : i32
    %c0_i32_0 = arith.constant 0 : i32
    %c0_i32_1 = arith.constant 0 : i32
    return %c0_i32, %c0_i32_0 : i32, i32
  }
  func.func @transform_5(%arg0: i32, %arg1: i32) -> (i32, i32) {
    %c0_i32 = arith.constant 0 : i32
    %c0_i32_0 = arith.constant 0 : i32
    return %arg0, %c0_i32 : i32, i32
  }
}

</mosaic_0001>

<bundles_post_ra>
// kernel: tpu_custom_call.1
= control target key start
LH: loop header
LB: loop body
LE: loop exit
PB: predicated region body
PF: predicated region fallthrough
CT: control target
= control target key end

     0   :  { %s1401_s0 = inlined_call_operand.hbm [shape: f32[16,128], index: 0, kind: input, shape index: {}]   ;;  %s1402_s1 = inlined_call_operand.hbm [shape: f32[128,512], index: 1, kind: input, shape index: {}]   ;;  %s1403_s2 = inlined_call_operand.hbm [shape: f32[1,512], index: 2, kind: input, shape index: {}]   ;;  %s1404_s3 = inlined_call_operand.hbm [shape: f32[512,128], index: 3, kind: input, shape index: {}]   ;;  %s1405_s4 = inlined_call_operand.vmem [shape: f32[1,128], index: 4, kind: input, shape index: {}]   ;;  %s1406_s5 = inlined_call_operand.hbm [shape: f32[16,128], index: 5, kind: output, shape index: {}]  }
   0x1   :  { %1410 = sst [smem:[#allocation16_spill]] %s1401_s0 }
   0x2   :  { %10 = vsyncpa [#allocation4], 0 }
   0x3   :  { %11 = vsyncpa [#allocation7], 0 }
   0x4   :  { %13 = vsyncpa [#allocation7 + $0x1], 0 }
   0x5   :  { %14 = vsyncpa [#allocation10], 0 }
   0x6   :  { %16 = vsyncpa [#allocation10 + $0x1], 0 }
   0x7   :  { %17 = vsyncpa [#allocation5], 0  ;;  %s1144_s18 = smov 0   ;;  %s1146_s19 = smov 0  }
   0x8   :  { %s1148_s20 = smov 0   ;;  %s1150_s21 = smov 0  }
   0x9   :  { %s1152_s22 = smov 0   ;;  %s1154_s23 = smov 0  }
   0xa LB: > { %s32_s24 = sadd.s32 1, %s1094_s22  ;;  %s68_s25 = sadd.s32 1, %s1086_s20  ;;  %s1098_s23 = sphi %s1154_s23, %s23_s23   ;;  %s1094_s22 = sphi %s1152_s22, %s1423_s22   ;;  %s1090_s21 = sphi %s1150_s21, %s1422_s21   ;;  %s1086_s20 = sphi %s1148_s20, %s1421_s20   ;;  %s1082_s19 = sphi %s1146_s19, %s1420_s19   ;;  %s1078_s18 = sphi %s1144_s18, %s1419_s18  }
   0xb   : > { %p33_p0 = scmp.ge.s32.totalorder %s32_s24, 2  ;;  %p75_p1 = scmp.ne.s32.totalorder %s1086_s20, %s1082_s19 }
   0xc   : > { %p76_p2 = scmp.eq.s32.totalorder %s1098_s23, 0  ;;  %p839_p4 = scmp.lt.s32.totalorder %s1098_s23, 2 }
   0xd   : > { %s1425_s24 = smov (%p33_p0, %s32_s24), 0  ;;  %s223_s27 = sand.u32 1, %s1098_s23  }
   0xe   : > { %p77_p3 = por %p76_p2, %p75_p1  ;;  %s65_s26 = ssub.s32 %s1094_s22, %s1425_s24 }
   0xf   : > { %p66_p5 = scmp.eq.s32.totalorder %s65_s26, 0  ;;  %s1186_s28 = sand.u32 1, %s1086_s20  }
  0x10   : > { %s769_s29 = sshll.u32 %s1094_s22, 8  ;;  %s1407_s6 = sshll.u32 %s1186_s28, 8 }
  0x11   : > { %s1190_s30 = scalar_select %p66_p5, %s1086_s20, %s68_s25  }
  0x12   : > { %s233_s9 = scalar_lea.hbm %s1402_s1, %s769_s29  ;;  %p1196_p6 = pnand %p839_p4, %p77_p3 }
  0x13   : > { %s227_s11 = scalar_lea.vmem [#allocation6], %s1407_s6  ;;  %s1202_s13 = scalar_lea.sflag [#allocation7], %s223_s27 }
  0x14   : > { %s234_s12 = sshll.u32 %s227_s11, 4  ;;  %p904_p7 = pneg %p1196_p6  ;;  %s235_s12 = int_to_ptr.vmem [resolvable:$true] %s234_s12 }
  0x15   : > { %s915_s14 = scalar_lea.vmem %s235_s12, 4096  ;;  %s1100_s15 = smov [#allocation6]  }
  0x16   : > { %p916_p8 = scmp.ne.s32.totalorder %s235_s12, %s915_s14  ;;  %s920_s16 = sshll.u32 %s1100_s15, 4  ;;  %s921_s16 = int_to_ptr.vmem [resolvable:$false] %s920_s16 }
  0x17   : > { %s922_s17 = scalar_lea.vmem %s921_s16, 8192  ;;  %p923_p11 = scmp.lt.s32.totalorder %s235_s12, %s921_s16 }
  0x18   : > { %p918_p9 = pnand %p916_p8, %p904_p7  ;;  %p924_p12 = scmp.lt.s32.totalorder %s922_s17, %s915_s14 }
  0x1a   : > { %p919_p10 = pneg %p918_p9  ;;  %p925_p13 = por %p924_p12, %p923_p11 }
  0x1c   : > { %p926_p0 = pnand %p925_p13, %p919_p10 }
  0x1e   : > { %929 = shalt.err (!%p926_p0)
}
  0x1f   : > { %s1101_s25 = smov 512   ;;  %s1102_s26 = smov 256  }
  0x20   : > { %s1103_s27 = smov 16   ;;  %s1213_s29 = sadd.s32 4294967295, %s1098_s23  }
  0x21   : > { %831 = dma.hbm_to_vmem [thread:$0]  (!%p1196_p6), %s233_s9, 4096, %s235_s12, %s1202_s13, %s1101_s25, %s1102_s26, %s1103_s27  }
  0x22   : > { %p81_p1 = scmp.ne.s32.totalorder %s1082_s19, %s1078_s18  ;;  %p82_p2 = scmp.eq.s32.totalorder %s1213_s29, 0 }
  0x23   : > { %p745_p3 = scmp.ge.s32.totalorder %s1098_s23, 1  ;;  %p191_p4 = scmp.lt.s32.totalorder %s1098_s23, 3 }
  0x24   : > { %p1222_p5 = por %p82_p2, %p81_p1  ;;  %s1104_s9 = smov [#allocation3]  }
  0x25   : > { %p1226_p8 = pnand %p745_p3, %p191_p4  ;;  %s206_s11 = sshll.u32 %s1104_s9, 4  ;;  %s207_s11 = int_to_ptr.vmem [resolvable:$true] %s206_s11 }
  0x26   : > { %s751_s12 = sshll.u32 %s1186_s28, 1  ;;  %s770_s18 = sshll.u32 %s1094_s22, 5 }
  0x27   : > { %p824_p9 = pneg %p1226_p8  ;;  %s1243_s17 = scalar_lea.hbm %s1403_s2, %s770_s18 }
  0x28   : > { %s248_s25 = scalar_lea.vmem [#allocation8], %s751_s12  ;;  %s941_s27 = scalar_lea.vmem %s207_s11, 256 }
  0x29   : > { %p1236_p10 = pnand %p824_p9, %p82_p2  ;;  %s256_s26 = sshll.u32 %s248_s25, 4  ;;  %s257_s26 = int_to_ptr.vmem [resolvable:$true] %s256_s26 }
  0x2a   : > { %p942_p12 = scmp.ne.s32.totalorder %s207_s11, %s941_s27  ;;  %p949_p1 = scmp.lt.s32.totalorder %s207_s11, %s207_s11 }
  0x2b   : > { %p932_p11 = pneg %p1236_p10  ;;  %p950_p3 = scmp.lt.s32.totalorder %s941_s27, %s941_s27 }
  0x2d   : > { %p944_p13 = pnand %p942_p12, %p932_p11  ;;  %p951_p4 = por %p950_p3, %p949_p1 }
  0x2f   : > { %p945_p0 = pneg %p944_p13 }
  0x31   : > { %p952_p9 = pnand %p951_p4, %p945_p0 }
  0x33   : > { %955 = shalt.err (!%p952_p9)
}
  0x34   : > { %s1408_s9 = smov 128   ;;  %s1409_s15 = smov 8  }
  0x35   : > { %s1415_s0 = sld [smem:[#allocation16_spill]]  ;;  %s969_s16 = scalar_lea.vmem %s257_s26, 32 }
  0x36   : > { %p970_p11 = scmp.ne.s32.totalorder %s257_s26, %s969_s16  ;;  %s1107_s25 = smov [#allocation8]  }
  0x37   : > { %s974_s27 = sshll.u32 %s1107_s25, 4  ;;  %s975_s27 = int_to_ptr.vmem [resolvable:$false] %s974_s27 }
  0x38   : > { %p972_p12 = pnand %p970_p11, %p904_p7  ;;  %s976_s6 = scalar_lea.vmem %s975_s27, 64 }
  0x39   : > { %p977_p0 = scmp.lt.s32.totalorder %s257_s26, %s975_s27  ;;  %p978_p1 = scmp.lt.s32.totalorder %s976_s6, %s969_s16 }
  0x3a   : > { %p973_p13 = pneg %p972_p12 }
  0x3b   : > { %827 = dma.hbm_to_vmem [thread:$0]  (!%p1236_p10), %s1415_s0, 256, %s207_s11, [#allocation4], %s1408_s9, %s1408_s9, %s1409_s15  }
  0x3c   : > { %p979_p3 = por %p978_p1, %p977_p0 }
  0x3e   : > { %p980_p4 = pnand %p979_p3, %p973_p13 }
  0x40   : > { %983 = shalt.err (!%p980_p4)
}
  0x41   : > { %834 = dma.hbm_to_vmem [thread:$0]  (!%p1196_p6), %s1243_s17, 32, %s257_s26, %s1202_s13  }
  0x42   : > { %s771_s11 = sshll.u32 %s1094_s22, 12  ;;  %s1416_s14 = sshll.u32 %s1186_s28, 8 }
  0x43   : > { %s267_s12 = scalar_lea.vmem [#allocation9], %s1416_s14  ;;  %s273_s6 = scalar_lea.hbm %s1404_s3, %s771_s11 }
  0x44   : > { %s274_s18 = sshll.u32 %s267_s12, 4  ;;  %s264_s16 = scalar_lea.sflag [#allocation10], %s1186_s28  ;;  %s275_s18 = int_to_ptr.vmem [resolvable:$true] %s274_s18 }
  0x45   : > { %s997_s27 = scalar_lea.vmem %s275_s18, 4096  ;;  %s1108_s15 = smov [#allocation9]  }
  0x46   : > { %p998_p10 = scmp.ne.s32.totalorder %s275_s18, %s997_s27  ;;  %s1002_s0 = sshll.u32 %s1108_s15, 4  ;;  %s1003_s0 = int_to_ptr.vmem [resolvable:$false] %s1002_s0 }
  0x47   : > { %s1004_s13 = scalar_lea.vmem %s1003_s0, 8192  ;;  %p1005_p12 = scmp.lt.s32.totalorder %s275_s18, %s1003_s0 }
  0x48   : > { %p1000_p9 = pnand %p998_p10, %p904_p7  ;;  %p1006_p13 = scmp.lt.s32.totalorder %s1004_s13, %s997_s27 }
  0x4a   : > { %p1001_p11 = pneg %p1000_p9  ;;  %p1007_p0 = por %p1006_p13, %p1005_p12 }
  0x4c   : > { %p1008_p1 = pnand %p1007_p0, %p1001_p11 }
  0x4e   : > { %1011 = shalt.err (!%p1008_p1)
}
  0x4f   : > { %s1417_s17 = smov 8   ;;  %s1418_s26 = smov 128  }
  0x50   : > { %837 = dma.hbm_to_vmem [thread:$0]  (!%p1196_p6), %s273_s6, 4096, %s275_s18, %s264_s16, %s1418_s26, %s1418_s26, %s1417_s17  }
  0x51   : > { %286 = sbr.rel (%p1226_p8) target bundleno = 566 (0x236), region = 40 }
  0x56   : > { %1061 = dma.done.wait (%p82_p2), [#allocation4], 256  }
  0x57   : > { %1063 = vsyncadd (%p82_p2), [#allocation4], 4294967040  ;;  %s292_s0 = sand.u32 1, %s1213_s29   ;;  %s294_s28 = sand.u32 1, %s1082_s19  }
  0x58   : > { %s759_s9 = sshll.u32 %s294_s28, 8  ;;  %s293_s10 = scalar_lea.sflag [#allocation7], %s292_s0 }
  0x59   : > { %s1285_s15 = scalar_lea.vmem [#allocation6], %s759_s9 }
  0x5a   : > { %1065 = dma.done.wait (%p1222_p5), %s293_s10, 4128  }
  0x5b   : > { %1067 = vsyncadd (%p1222_p5), %s293_s10, 4294963168  ;;  %s760_s8 = sshll.u32 %s294_s28, 1  ;;  %s311_s14 = scalar_lea.sflag [#allocation10], %s294_s28 }
  0x5c   : > { %s1291_s11 = scalar_lea.vmem [#allocation8], %s760_s8  ;;  %s1293_s12 = scalar_lea.vmem [#allocation9], %s759_s9 }
  0x5d   : > { %1069 = dma.done.wait (%p1222_p5), %s311_s14, 4096  }
  0x5e   : > { %1071 = vsyncadd (%p1222_p5), %s311_s14, 4294963200  ;;  %p762_p6 = scmp.ne.s32.totalorder %s1090_s21, 0 }
  0x60   : > { %354 = sbr.rel (%p762_p6) target bundleno = 103 (0x67), region = 60 }
  0x65   : > { %v1109_v0 = vmov 0.0  }
  0x66   : > { %355 = vst [vmem:[#allocation2] sm:$0xff] %v1109_v0  ;;  %356 = vst [vmem:[#allocation2 + $0x8] sm:$0xff] %v1109_v0 }
  0x67 PF: > { %v390_v1 = vld [vmem:[%s1285_s15 + $0xf8] sm:$0xff]  ;;  %v389_v2 = vld [vmem:[%s1285_s15 + $0xf0] sm:$0xff]  ;;  %v388_v3 = vld [vmem:[%s1285_s15 + $0xe8] sm:$0xff]  ;;  %v1110_v5 = vmov 0.0   ;;  %p763_p7 = scmp.ne.s32.totalorder %s1090_s21, 1 }
  0x68   : > { %403 = vmatprep.subr.mxu0 %v390_v1  ;;  %v387_v4 = vld [vmem:[%s1285_s15 + $0xe0] sm:$0xff]  ;;  %467 = vmatprep.mubr.f32.mxu0 %v1110_v5  ;;  %v386_v6 = vld [vmem:[%s1285_s15 + $0xd8] sm:$0xff]  ;;  %v385_v7 = vld [vmem:[%s1285_s15 + $0xd0] sm:$0xff] }
  0x69   : > { %404 = vmatpush1.msra.mxu0 %v389_v2  ;;  %v384_v8 = vld [vmem:[%s1285_s15 + $0xc8] sm:$0xff]  ;;  %v383_v9 = vld [vmem:[%s1285_s15 + $0xc0] sm:$0xff]  ;;  %v382_v10 = vld [vmem:[%s1285_s15 + $0xb8] sm:$0xff] }
  0x6a   : > { %405 = vmatprep.subr.mxu0 %v388_v3  ;;  %v381_v11 = vld [vmem:[%s1285_s15 + $0xb0] sm:$0xff]  ;;  %v380_v12 = vld [vmem:[%s1285_s15 + $0xa8] sm:$0xff]  ;;  %v379_v13 = vld [vmem:[%s1285_s15 + $0xa0] sm:$0xff] }
  0x6b   : > { %406 = vmatpush1.msra.mxu0 %v387_v4  ;;  %v378_v14 = vld [vmem:[%s1285_s15 + $0x98] sm:$0xff]  ;;  %v377_v15 = vld [vmem:[%s1285_s15 + $0x90] sm:$0xff]  ;;  %v376_v18 = vld [vmem:[%s1285_s15 + $0x88] sm:$0xff]  ;;  %v393_v4 = vlaneseq }
  0x6c   : > { %407 = vmatprep.subr.mxu0 %v386_v6  ;;  %v517_v16 = vld [vmem:[%s1293_s12 + $0xf8] sm:$0xff]  ;;  %v516_v19 = vld [vmem:[%s1293_s12 + $0xf0] sm:$0xff]  ;;  %v515_v22 = vld [vmem:[%s1293_s12 + $0xe8] sm:$0xff] }
  0x6d   : > { %408 = vmatpush1.msra.mxu0 %v385_v7  ;;  %v501_v17 = vld [vmem:[%s1293_s12 + $0x78] sm:$0xff]  ;;  %772 = vmatprep.subr.mxu1 %v517_v16  ;;  %v500_v20 = vld [vmem:[%s1293_s12 + $0x70] sm:$0xff]  ;;  %v499_v24 = vld [vmem:[%s1293_s12 + $0x68] sm:$0xff] }
  0x6e   : > { %409 = vmatprep.subr.mxu0 %v384_v8  ;;  %v375_v21 = vld [vmem:[%s1285_s15 + $0x80] sm:$0xff]  ;;  %773 = vmatpush3.msra.mxu1 %v501_v17  ;;  %v374_v23 = vld [vmem:[%s1285_s15 + $0x78] sm:$0xff]  ;;  %v373_v25 = vld [vmem:[%s1285_s15 + $0x70] sm:$0xff] }
  0x6f   : > { %410 = vmatpush1.msra.mxu0 %v383_v9  ;;  %774 = vmatprep.subr.mxu1 %v516_v19  ;;  %v514_v26 = vld [vmem:[%s1293_s12 + $0xe0] sm:$0xff]  ;;  %v513_v30 = vld [vmem:[%s1293_s12 + $0xd8] sm:$0xff]  ;;  %v369_v33 = vld [vmem:[%s1285_s15 + $0x50] sm:$0xff] }
  0x70   : > { %411 = vmatprep.subr.mxu0 %v382_v10  ;;  %775 = vmatpush3.msra.mxu1 %v500_v20  ;;  %v372_v27 = vld [vmem:[%s1285_s15 + $0x68] sm:$0xff]  ;;  %v371_v29 = vld [vmem:[%s1285_s15 + $0x60] sm:$0xff]  ;;  %v370_v31 = vld [vmem:[%s1285_s15 + $0x58] sm:$0xff] }
  0x71   : > { %412 = vmatpush1.msra.mxu0 %v381_v11  ;;  %776 = vmatprep.subr.mxu1 %v515_v22  ;;  %v498_v28 = vld [vmem:[%s1293_s12 + $0x60] sm:$0xff]  ;;  %v497_v32 = vld [vmem:[%s1293_s12 + $0x58] sm:$0xff]  ;;  %v512_v34 = vld [vmem:[%s1293_s12 + $0xd0] sm:$0xff] }
  0x72   : > { %413 = vmatprep.subr.mxu0 %v380_v12  ;;  %777 = vmatpush3.msra.mxu1 %v499_v24  ;;  %v368_v35 = vld [vmem:[%s1285_s15 + $0x48] sm:$0xff]  ;;  %v496_v36 = vld [vmem:[%s1293_s12 + $0x50] sm:$0xff]  ;;  %v367_v37 = vld [vmem:[%s1285_s15 + $0x40] sm:$0xff] }
  0x73   : > { %414 = vmatpush1.msra.mxu0 %v379_v13  ;;  %778 = vmatprep.subr.mxu1 %v514_v26  ;;  %v511_v38 = vld [vmem:[%s1293_s12 + $0xc8] sm:$0xff]  ;;  %v366_v39 = vld [vmem:[%s1285_s15 + $0x38] sm:$0xff]  ;;  %v510_v42 = vld [vmem:[%s1293_s12 + $0xc0] sm:$0xff] }
  0x74   : > { %415 = vmatprep.subr.mxu0 %v378_v14  ;;  %779 = vmatpush3.msra.mxu1 %v498_v28  ;;  %v495_v40 = vld [vmem:[%s1293_s12 + $0x48] sm:$0xff]  ;;  %v494_v44 = vld [vmem:[%s1293_s12 + $0x40] sm:$0xff]  ;;  %v509_v46 = vld [vmem:[%s1293_s12 + $0xb8] sm:$0xff] }
  0x75   : > { %416 = vmatpush1.msra.mxu0 %v377_v15  ;;  %780 = vmatprep.subr.mxu1 %v513_v30  ;;  %v365_v41 = vld [vmem:[%s1285_s15 + $0x30] sm:$0xff]  ;;  %v364_v43 = vld [vmem:[%s1285_s15 + $0x28] sm:$0xff]  ;;  %v363_v45 = vld [vmem:[%s1285_s15 + $0x20] sm:$0xff] }
  0x76   : > { %417 = vmatprep.subr.mxu0 %v376_v18  ;;  %781 = vmatpush3.msra.mxu1 %v497_v32  ;;  %v362_v47 = vld [vmem:[%s1285_s15 + $0x18] sm:$0xff]  ;;  %v361_v49 = vld [vmem:[%s1285_s15 + $0x10] sm:$0xff]  ;;  %v360_v51 = vld [vmem:[%s1285_s15 + $0x8] sm:$0xff] }
  0x77   : > { %418 = vmatpush1.msra.mxu0 %v375_v21  ;;  %782 = vmatprep.subr.mxu1 %v512_v34  ;;  %v493_v48 = vld [vmem:[%s1293_s12 + $0x38] sm:$0xff]  ;;  %v508_v50 = vld [vmem:[%s1293_s12 + $0xb0] sm:$0xff]  ;;  %v507_v54 = vld [vmem:[%s1293_s12 + $0xa8] sm:$0xff] }
  0x78   : > { %419 = vmatprep.subr.mxu0 %v374_v23  ;;  %783 = vmatpush3.msra.mxu1 %v496_v36  ;;  %v492_v52 = vld [vmem:[%s1293_s12 + $0x30] sm:$0xff]  ;;  %v359_v53 = vld [vmem:[%s1285_s15] sm:$0xff]  ;;  %v491_v56 = vld [vmem:[%s1293_s12 + $0x28] sm:$0xff] }
  0x79   : > { %420 = vmatpush1.msra.mxu0 %v373_v25  ;;  %784 = vmatprep.subr.mxu1 %v511_v38  ;;  %v357_v55 = vld [vmem:[#allocation3] sm:$0xff]  ;;  %v506_v57 = vld [vmem:[%s1293_s12 + $0xa0] sm:$0xff]  ;;  %v358_v59 = vld [vmem:[#allocation3 + $0x8] sm:$0xff] }
  0x7a   : > { %421 = vmatprep.subr.mxu0 %v372_v27  ;;  %785 = vmatpush3.msra.mxu1 %v495_v40  ;;  %v490_v58 = vld [vmem:[%s1293_s12 + $0x20] sm:$0xff]  ;;  %v505_v60 = vld [vmem:[%s1293_s12 + $0x98] sm:$0xff]  ;;  %v504_v62 = vld [vmem:[%s1293_s12 + $0x90] sm:$0xff] }
  0x7b   : > { %422 = vmatpush1.msra.mxu0 %v371_v29  ;;  %786 = vmatprep.subr.mxu1 %v510_v42  ;;  %v489_v61 = vld [vmem:[%s1293_s12 + $0x18] sm:$0xff]  ;;  %v488_v63 = vld [vmem:[%s1293_s12 + $0x10] sm:$0xff]  ;;  %v503_v0 = vld [vmem:[%s1293_s12 + $0x88] sm:$0xff] }
  0x7c   : > { %423 = vmatprep.subr.mxu0 %v370_v31  ;;  %787 = vmatpush3.msra.mxu1 %v494_v44  ;;  %v487_v1 = vld [vmem:[%s1293_s12 + $0x8] sm:$0xff]  ;;  %v502_v2 = vld [vmem:[%s1293_s12 + $0x80] sm:$0xff]  ;;  %v391_v7 = vld [vmem:[%s1291_s11] sm:$0x3] }
  0x7d   : > { %424 = vmatpush1.msra.mxu0 %v369_v33  ;;  %788 = vmatprep.subr.mxu1 %v509_v46  ;;  %v486_v3 = vld [vmem:[%s1293_s12] sm:$0xff] }
  0x7e   : > { %425 = vmatprep.subr.mxu0 %v368_v35  ;;  %789 = vmatpush3.msra.mxu1 %v493_v48  ;;  %v484_v24 = vld [vmem:[#allocation2] sm:$0xff]  ;;  %v485_v29 = vld [vmem:[#allocation2 + $0x8] sm:$0xff] }
  0x7f   : > { %426 = vmatpush1.msra.mxu0 %v367_v37  ;;  %790 = vmatprep.subr.mxu1 %v508_v50 }
  0x80   : > { %427 = vmatprep.subr.mxu0 %v366_v39  ;;  %791 = vmatpush3.msra.mxu1 %v492_v52 }
  0x81   : > { %428 = vmatpush1.msra.mxu0 %v365_v41  ;;  %792 = vmatprep.subr.mxu1 %v507_v54 }
  0x82   : > { %429 = vmatprep.subr.mxu0 %v364_v43  ;;  %793 = vmatpush3.msra.mxu1 %v491_v56 }
  0x83   : > { %430 = vmatpush1.msra.mxu0 %v363_v45  ;;  %794 = vmatprep.subr.mxu1 %v506_v57 }
  0x84   : > { %431 = vmatprep.subr.mxu0 %v362_v47  ;;  %795 = vmatpush3.msra.mxu1 %v490_v58 }
  0x85   : > { %432 = vmatpush1.msra.mxu0 %v361_v49  ;;  %796 = vmatprep.subr.mxu1 %v505_v60 }
  0x86   : > { %433 = vmatprep.subr.mxu0 %v360_v51  ;;  %797 = vmatpush3.msra.mxu1 %v489_v61 }
  0x87   : > { %434 = vmatpush1.msra.mxu0 %v359_v53  ;;  %798 = vmatprep.subr.mxu1 %v504_v62 }
  0x88   : > { %468 = vmatmul.mubr.f32.vlgmr.msra.gmra.mxu0 %v357_v55  ;;  %799 = vmatpush3.msra.mxu1 %v488_v63 }
  0x89   : > { %473 = vmatprep.mubr.f32.mxu0 %v1110_v5  ;;  %800 = vmatprep.subr.mxu1 %v503_v0  ;;  %v394_v5 = vshrl.u32 %v393_v4, 7 }
  0x8a   : > { %801 = vmatpush3.msra.mxu1 %v487_v1 }
  0x8b   : > { %802 = vmatprep.subr.mxu1 %v502_v2  ;;  %v395_v6 = vsub.s32 0, %v394_v5  ;;  %v399_v8 = vsub.s32 1, %v394_v5 }
  0x8c   : > { %474 = vmatmul.mubr.f32.gmra.mxu0 %v358_v59  ;;  %803 = vmatpush3.msra.mxu1 %v486_v3 }
  0x8d   : > { %v396_v9 = vrot.slane %v391_v7, %v395_v6  ;;  %v400_v10 = vrot.slane %v391_v7, %v399_v8 }
 0x148   : > { %v469_v11 = vpop.f32.mrf.mxu0 }
 0x149   : > { %v470_v12 = vadd.f32 %v469_v11, %v396_v9 }
 0x14a   : > { %v471_v13 = vpop.f32.mrf.mxu0 }
 0x14b   : > { %v472_v14 = vadd.f32 %v471_v13, %v400_v10  ;;  %v480_v17 = vmax.f32 %v470_v12, 0.0 }
 0x14c   : > { %v475_v15 = vpop.f32.mrf.mxu0 }
 0x14d   : > { %v481_v16 = vmax.f32 %v472_v14, 0.0  ;;  %v476_v18 = vadd.f32 %v475_v15, %v396_v9 }
 0x14e   : > { %v477_v19 = vpop.f32.mrf.mxu0 }
 0x14f   : > { %v478_v20 = vadd.f32 %v477_v19, %v400_v10  ;;  %582 = vmatprep.mubr.f32.mxu1 %v481_v16  ;;  %v482_v22 = vmax.f32 %v476_v18, 0.0 }
 0x150   : > { %583 = vmatmul.mubr.f32.vlgmr.msra.gmra.mxu1 %v480_v17 }
 0x151   : > { %v483_v21 = vmax.f32 %v478_v20, 0.0 }
 0x153   : > { %587 = vmatprep.mubr.f32.mxu1 %v483_v21 }
 0x154   : > { %588 = vmatmul.mubr.f32.gmra.mxu1 %v482_v22 }
 0x210   : > { %v804_v23 = vpop.f32.mrf.mxu1 }
 0x212   : > { %v805_v25 = vpop.f32.mrf.mxu1 }
 0x213   : > { %v806_v26 = vadd.f32 %v805_v25, %v804_v23 }
 0x214   : > { %v807_v27 = vpop.f32.mrf.mxu1 }
 0x215   : > { %v593_v28 = vadd.f32 %v806_v26, %v484_v24 }
 0x216   : > { %v808_v30 = vpop.f32.mrf.mxu1 }
 0x217   : > { %595 = vst [vmem:[#allocation2] sm:$0xff] %v593_v28  ;;  %v809_v31 = vadd.f32 %v808_v30, %v807_v27  ;;  %600 = sbr.rel (%p763_p7) target bundleno = 550 (0x226), region = 64 }
 0x219   : > { %v594_v32 = vadd.f32 %v809_v31, %v485_v29 }
 0x21b   : > { %596 = vst [vmem:[#allocation2 + $0x8] sm:$0xff] %v594_v32 }
 0x21c   : > { %v764_v34 = vld [vmem:[%s1405_s4] ss:$0 sm:$0xff] }
 0x21e   : > { %v601_v33 = vld [vmem:[#allocation2] sm:$0xff] }
 0x21f   : > { %v610_v36 = vadd.f32 %v764_v34, %v601_v33 }
 0x221   : > { %612 = vst [vmem:[#allocation11] sm:$0xff] %v610_v36 }
 0x222   : > { %v602_v35 = vld [vmem:[#allocation2 + $0x8] sm:$0xff] }
 0x223   : > { %v611_v37 = vadd.f32 %v764_v34, %v602_v35 }
 0x225   : > { %613 = vst [vmem:[#allocation11 + $0x8] sm:$0xff] %v611_v37 }
 0x226 PF: > { %p841_p2 = scmp.eq.s32.totalorder %s1213_s29, 1  ;;  %s1111_s25 = smov [#allocation11]  }
 0x227   : > { %s623_s6 = sshll.u32 %s1111_s25, 4  ;;  %s624_s6 = int_to_ptr.vmem [resolvable:$true] %s623_s6 }
 0x228   : > { %s1012_s16 = scalar_lea.vmem %s624_s6, 256  ;;  %p1019_p4 = scmp.lt.s32.totalorder %s624_s6, %s624_s6 }
 0x229   : > { %p1013_p5 = scmp.ne.s32.totalorder %s624_s6, %s1012_s16  ;;  %p1020_p10 = scmp.lt.s32.totalorder %s1012_s16, %s1012_s16 }
 0x22b   : > { %p1014_p8 = pnand %p1013_p5, %p841_p2  ;;  %p1021_p9 = por %p1020_p10, %p1019_p4 }
 0x22d   : > { %p1015_p3 = pneg %p1014_p8 }
 0x22f   : > { %p1022_p11 = pnand %p1021_p9, %p1015_p3 }
 0x231   : > { %1025 = shalt.err (!%p1022_p11)
}
 0x232   : > { %s1112_s21 = smov 128   ;;  %s1113_s27 = smov 8  }
 0x233   : > { %821 = dma.vmem_to_hbm [thread:$0]  (%p841_p2), %s624_s6, 256, %s1406_s5, [#allocation5], %s1112_s21, %s1112_s21, %s1113_s27  }
 0x234   : > { %1073 = dma.done.wait (%p841_p2), [#allocation5], 256  }
 0x235   : > { %1075 = vsyncadd (%p841_p2), [#allocation5], 4294967040 }
 0x236 PF: > { %s23_s23 = sadd.s32 1, %s1098_s23   ;;  %s1419_s18 = smov %s1082_s19 }
 0x237   : > { %p20_p12 = scmp.ge.s32.totalorder %s23_s23, 4   ;;  %s1420_s19 = smov %s1086_s20 }
 0x238   : > { %s1421_s20 = smov %s1190_s30  ;;  %s1422_s21 = smov %s1094_s22 }
 0x239   : > { %s1423_s22 = smov %s1425_s24  ;;  %22 = sbr.rel (!%p20_p12) target bundleno = 10 (0xa), region = 116 }
 0x23e   :  { %639 = vsyncpa [#allocation4], 1 }
 0x23f   :  { %641 = vsyncpa [#allocation4 + $0x1], 1 }
 0x240   :  { %642 = vsyncpa [#allocation7], 1 }
 0x241   :  { %644 = vsyncpa [#allocation7 + $0x1], 1 }
 0x242   :  { %645 = vsyncpa [#allocation10], 1 }
 0x243   :  { %647 = vsyncpa [#allocation10 + $0x1], 1 }
 0x244   :  { %648 = vsyncpa [#allocation5], 1 }
 0x245   :  { %650 = vsyncpa [#allocation5 + $0x1], 1 }

</bundles_post_ra>
